<compile_context>
chip_gen: v6e
topology: v6e:2x2x1
jax: 0.10.0
libtpu: 0.0.40
codegen_flags: <defaults>
</compile_context>

<pallas_src>
import jax
import jax.numpy as jnp
from jax import lax
from jax.experimental import pallas as pl
from jax.experimental.pallas import tpu as pltpu

_LN_EPS = 1e-5  # PyTorch nn.LayerNorm default


def _ada_ln_kernel(x_ref, cond_ref, wt_ref, o_ref):
    # x_ref: (S, D) f32, cond_ref: (1, C) f32, wt_ref: (C, D) f32, o_ref: (S, D) f32
    x = x_ref[...]                                          # (S, D)

    # LayerNorm over the last (lane) dim, no affine, biased variance.
    mean = jnp.mean(x, axis=-1, keepdims=True)              # (S, 1)
    xc = x - mean
    var = jnp.mean(xc * xc, axis=-1, keepdims=True)         # (S, 1)
    normed = xc * lax.rsqrt(var + _LN_EPS)                  # (S, D)

    # gamma = condition @ W.T  (weight pre-transposed in the wrapper) -> (1, D)
    gamma = jnp.dot(cond_ref[...], wt_ref[...],
                    preferred_element_type=jnp.float32)     # MXU

    # Modulate and store directly (broadcast (1, D) over sublanes).
    o_ref[...] = normed * (gamma + 1.0)


def adaptive_layer_norm(x, condition, gamma_weight):
    """x: (B, S, D), condition: (B, C), gamma_weight: (D, C) -> (B, S, D)."""
    b, s, d = x.shape
    c = condition.shape[-1]

    x32 = x.astype(jnp.float32)
    cond3 = condition.reshape(b, 1, c).astype(jnp.float32)
    # Hoist the parameter transpose out of the kernel (learned constant).
    w_t = gamma_weight.astype(jnp.float32).T                # (C, D)

    return pl.pallas_call(
        _ada_ln_kernel,
        out_shape=jax.ShapeDtypeStruct((b, s, d), jnp.float32),
        grid=(b,),
        in_specs=[
            pl.BlockSpec((None, s, d), lambda i: (i, 0, 0)),   # x    -> (S, D)
            pl.BlockSpec((None, 1, c), lambda i: (i, 0, 0)),   # cond -> (1, C)
            pl.BlockSpec((c, d), lambda i: (0, 0)),            # W^T  -> (C, D)
        ],
        out_specs=pl.BlockSpec((None, s, d), lambda i: (i, 0, 0)),
        compiler_params=pltpu.CompilerParams(
            dimension_semantics=("parallel",),                 # megacore on v7x
        ),
    )(x32, cond3, w_t)


def _reference(x, condition, gamma_weight):
    mean = jnp.mean(x, axis=-1, keepdims=True)
    var = jnp.mean((x - mean) ** 2, axis=-1, keepdims=True)
    normed = (x - mean) / jnp.sqrt(var + _LN_EPS)
    gamma = condition @ gamma_weight.T                       # (B, D)
    return normed * (gamma[:, None, :] + 1.0)


if __name__ == "__main__":
    batch, seq, dim = 2, 8, 32
    dim_condition = dim  # module default: dim_condition = default(None, dim)

    key = jax.random.PRNGKey(0)
    k_x, k_c, k_w = jax.random.split(key, 3)
    x = jax.random.normal(k_x, (batch, seq, dim), dtype=jnp.float32)
    condition = jax.random.normal(k_c, (batch, dim_condition), dtype=jnp.float32)
    # Note: the module zero-inits to_gamma.weight (output == normed at init);
    # we use small random weights so the gamma path is actually exercised.
    gamma_weight = 0.1 * jax.random.normal(k_w, (dim, dim_condition), dtype=jnp.float32)

    out = adaptive_layer_norm(x, condition, gamma_weight)
    out = jax.block_until_ready(out)

    ref = _reference(x, condition, gamma_weight)
    assert out.shape == (batch, seq, dim), out.shape
    assert jnp.allclose(out, ref, atol=1e-5, rtol=1e-5), "mismatch vs reference"

    print("KERNEL_OK")
</pallas_src>

<mosaic_0001>
module attributes {stable_mosaic.version = 11 : i64} {
  func.func @_ada_ln_kernel(%arg0: i32, %arg1: memref<1x8x32xf32, #tpu.memory_space<vmem>>, %arg2: memref<1x1x32xf32, #tpu.memory_space<vmem>>, %arg3: memref<32x32xf32, #tpu.memory_space<vmem>>, %arg4: memref<1x8x32xf32, #tpu.memory_space<vmem>>) attributes {dimension_semantics = [#tpu.dimension_semantics<parallel>], iteration_bounds = array<i64: 2>, scalar_prefetch = 0 : i64, scratch_operands = 0 : i64, tpu.core_type = #tpu.core_type<tc>, window_params = [{transform_indices = @transform_0, window_bounds = array<i64: 1, 8, 32>}, {transform_indices = @transform_1, window_bounds = array<i64: 1, 1, 32>}, {pipeline_mode = #tpu.pipeline_mode<synchronous>, transform_indices = @transform_2, window_bounds = array<i64: 32, 32>}, {transform_indices = @transform_3, window_bounds = array<i64: 1, 8, 32>}]} {
    %c0 = arith.constant 0 : index
    %c0_0 = arith.constant 0 : index
    %c0_1 = arith.constant 0 : index
    %0 = vector.load %arg1[%c0, %c0_0, %c0_1] : memref<1x8x32xf32, #tpu.memory_space<vmem>>, vector<1x8x32xf32>
    %1 = vector.shape_cast %0 : vector<1x8x32xf32> to vector<8x32xf32>
    %cst = arith.constant dense<0.000000e+00> : vector<8xf32>
    %2 = vector.multi_reduction <add>, %1, %cst [1] : vector<8x32xf32> to vector<8xf32>
    %3 = vector.shape_cast %2 : vector<8xf32> to vector<8x1xf32>
    %cst_2 = arith.constant 3.200000e+01 : f32
    %4 = vector.broadcast %cst_2 : f32 to vector<8x1xf32>
    %5 = arith.divf %3, %4 : vector<8x1xf32>
    %6 = vector.broadcast %5 : vector<8x1xf32> to vector<8x32xf32>
    %7 = arith.subf %1, %6 : vector<8x32xf32>
    %8 = arith.mulf %7, %7 : vector<8x32xf32>
    %cst_3 = arith.constant dense<0.000000e+00> : vector<8xf32>
    %9 = vector.multi_reduction <add>, %8, %cst_3 [1] : vector<8x32xf32> to vector<8xf32>
    %10 = vector.shape_cast %9 : vector<8xf32> to vector<8x1xf32>
    %cst_4 = arith.constant 3.200000e+01 : f32
    %11 = vector.broadcast %cst_4 : f32 to vector<8x1xf32>
    %12 = arith.divf %10, %11 : vector<8x1xf32>
    %cst_5 = arith.constant 9.99999974E-6 : f32
    %13 = vector.broadcast %cst_5 : f32 to vector<8x1xf32>
    %14 = arith.addf %12, %13 : vector<8x1xf32>
    %15 = math.rsqrt %14 : vector<8x1xf32>
    %16 = vector.broadcast %15 : vector<8x1xf32> to vector<8x32xf32>
    %17 = arith.mulf %7, %16 : vector<8x32xf32>
    %c0_6 = arith.constant 0 : index
    %c0_7 = arith.constant 0 : index
    %c0_8 = arith.constant 0 : index
    %18 = vector.load %arg2[%c0_6, %c0_7, %c0_8] : memref<1x1x32xf32, #tpu.memory_space<vmem>>, vector<1x1x32xf32>
    %19 = vector.shape_cast %18 : vector<1x1x32xf32> to vector<1x32xf32>
    %c0_9 = arith.constant 0 : index
    %c0_10 = arith.constant 0 : index
    %20 = vector.load %arg3[%c0_9, %c0_10] : memref<32x32xf32, #tpu.memory_space<vmem>>, vector<32x32xf32>
    %cst_11 = arith.constant dense<0.000000e+00> : vector<1x32xf32>
    %21 = tpu.matmul %19, %20, %cst_11 {dimension_numbers = #tpu.dot_dimension_numbers<[1], [0], [0], [1], [0, 0, 1, 1], [], []>} : vector<1x32xf32>, vector<32x32xf32>, vector<1x32xf32> -> vector<1x32xf32>
    %cst_12 = arith.constant 1.000000e+00 : f32
    %22 = vector.broadcast %cst_12 : f32 to vector<1x32xf32>
    %23 = arith.addf %21, %22 : vector<1x32xf32>
    %24 = vector.broadcast %23 : vector<1x32xf32> to vector<8x32xf32>
    %25 = arith.mulf %17, %24 : vector<8x32xf32>
    %c0_13 = arith.constant 0 : index
    %c0_14 = arith.constant 0 : index
    %c0_15 = arith.constant 0 : index
    %26 = vector.load %arg4[%c0_13, %c0_14, %c0_15] : memref<1x8x32xf32, #tpu.memory_space<vmem>>, vector<1x8x32xf32>
    %27 = vector.shape_cast %26 : vector<1x8x32xf32> to vector<8x32xf32>
    %28 = vector.shape_cast %25 : vector<8x32xf32> to vector<1x8x32xf32>
    tpu.vector_store %arg4[%c0_13, %c0_14, %c0_15], %28 {strides = array<i32>} : memref<1x8x32xf32, #tpu.memory_space<vmem>>, vector<1x8x32xf32>,
    return
  }
  func.func @transform_0(%arg0: i32) -> (i32, i32, i32) {
    %c0_i32 = arith.constant 0 : i32
    %c0_i32_0 = arith.constant 0 : i32
    %c0_i32_1 = arith.constant 0 : i32
    return %arg0, %c0_i32, %c0_i32_0 : i32, i32, i32
  }
  func.func @transform_1(%arg0: i32) -> (i32, i32, i32) {
    %c0_i32 = arith.constant 0 : i32
    %c0_i32_0 = arith.constant 0 : i32
    %c0_i32_1 = arith.constant 0 : i32
    return %arg0, %c0_i32, %c0_i32_0 : i32, i32, i32
  }
  func.func @transform_2(%arg0: i32) -> (i32, i32) {
    %c0_i32 = arith.constant 0 : i32
    %c0_i32_0 = arith.constant 0 : i32
    %c0_i32_1 = arith.constant 0 : i32
    return %c0_i32, %c0_i32_0 : i32, i32
  }
  func.func @transform_3(%arg0: i32) -> (i32, i32, i32) {
    %c0_i32 = arith.constant 0 : i32
    %c0_i32_0 = arith.constant 0 : i32
    %c0_i32_1 = arith.constant 0 : i32
    return %arg0, %c0_i32, %c0_i32_0 : i32, i32, i32
  }
}

</mosaic_0001>

<bundles_post_ra>
// kernel: tpu_custom_call.1
= control target key start
LH: loop header
LB: loop body
LE: loop exit
PB: predicated region body
PF: predicated region fallthrough
CT: control target
= control target key end

     0   :  { %8 = vsyncpa [#allocation3], 0  ;;  %s937_s0 = inlined_call_operand.hbm [shape: f32[2,8,32], index: 0, kind: input, shape index: {}]   ;;  %s938_s1 = inlined_call_operand.hbm [shape: f32[2,1,32], index: 1, kind: input, shape index: {}]   ;;  %s939_s2 = inlined_call_operand.hbm [shape: f32[32,32], index: 2, kind: input, shape index: {}]   ;;  %s940_s3 = inlined_call_operand.hbm [shape: f32[2,8,32], index: 3, kind: output, shape index: {}]  }
   0x1   :  { %10 = vsyncpa [#allocation3 + $0x1], 0 }
   0x2   :  { %11 = vsyncpa [#allocation6], 0 }
   0x3   :  { %13 = vsyncpa [#allocation6 + $0x1], 0 }
   0x4   :  { %14 = vsyncpa [#allocation4], 0 }
   0x5   :  { %16 = vsyncpa [#allocation4 + $0x1], 0  ;;  %s731_s12 = smov 0   ;;  %s733_s13 = smov 0  }
   0x6   :  { %s735_s14 = smov 0   ;;  %s737_s15 = smov 0  }
   0x7 LB: > { %s752_s16 = sadd.s32 4294967295, %s701_s15   ;;  %s447_s17 = sadd.s32 4294967294, %s701_s15   ;;  %s701_s15 = sphi %s737_s15, %s962_s15   ;;  %s697_s14 = sphi %s735_s14, %s961_s14   ;;  %s693_s13 = sphi %s733_s13, %s960_s13   ;;  %s689_s12 = sphi %s731_s12, %s959_s12  }
   0x8   : > { %p42_p0 = scmp.ne.s32.totalorder %s693_s13, %s689_s12  ;;  %p941_p1 = scmp.eq.s32.totalorder %s752_s16, 0 }
   0x9   : > { %p119_p3 = scmp.eq.s32.totalorder %s447_s17, 1  ;;  %p448_p5 = scmp.ge.s32.totalorder %s701_s15, 1 }
   0xa   : > { %p761_p4 = por %p941_p1, %p42_p0  ;;  %p126_p7 = scmp.lt.s32.totalorder %s701_s15, 3 }
   0xb   : > { %p766_p6 = por %p119_p3, %p42_p0  ;;  %s703_s21 = smov [#allocation7]  }
   0xc   : > { %s945_s18 = scalar_select %p761_p4, 1, 0 }
   0xd   : > { %s946_s19 = scalar_select %p766_p6, 1, 0 }
   0xe   : > { %p771_p8 = pnand %p448_p5, %p126_p7  ;;  %s138_s22 = sshll.u32 %s703_s21, 4  ;;  %s139_s22 = int_to_ptr.vmem [resolvable:$true] %s138_s22 }
   0xf   : > { %s785_s24 = sadd.s32 1, %s701_s15   ;;  %s29_s25 = sadd.s32 1, %s697_s14 }
  0x10   : > { %s947_s20 = scalar_select %p771_p8, 1, 0 }
  0x11   : > { %p489_p9 = pneg %p771_p8  ;;  %s26_s26 = ssub.s32 %s701_s15, %s785_s24 }
  0x12   : > { %s558_s27 = scalar_lea.vmem %s139_s22, 512  ;;  %p566_p5 = scmp.lt.s32.totalorder %s139_s22, %s139_s22 }
  0x13   : > { %p780_p11 = pnand %p489_p9, %p941_p1  ;;  %p559_p13 = scmp.ne.s32.totalorder %s139_s22, %s558_s27 }
  0x14   : > { %p567_p7 = scmp.lt.s32.totalorder %s558_s27, %s558_s27 }
  0x15   : > { %p549_p12 = pneg %p780_p11 }
  0x16   : > { %p568_p10 = por %p567_p7, %p566_p5 }
  0x17   : > { %p561_p0 = pnand %p559_p13, %p549_p12 }
  0x19   : > { %p562_p3 = pneg %p561_p0 }
  0x1b   : > { %p569_p2 = pnand %p568_p10, %p562_p3 }
  0x1d   : > { %572 = shalt.err (!%p569_p2)
}
  0x1e   : > { %s704_s28 = smov 128   ;;  %s705_s29 = smov 8  }
  0x1f   : > { %492 = dma.hbm_to_vmem [thread:$0]  (!%p780_p11), %s939_s2, 512, %s139_s22, [#allocation6], %s704_s28, %s704_s28, %s705_s29  }
  0x20   : > { %p27_p9 = scmp.eq.s32.totalorder %s26_s26, 0  ;;  %p36_p10 = scmp.ne.s32.totalorder %s697_s14, %s693_s13 }
  0x21   : > { %p37_p2 = scmp.eq.s32.totalorder %s701_s15, 0  ;;  %p505_p12 = scmp.lt.s32.totalorder %s701_s15, 2 }
  0x22   : > { %s802_s5 = scalar_select %p27_p9, %s697_s14, %s29_s25  }
  0x23   : > { %p38_p13 = por %p37_p2, %p36_p10  ;;  %p949_p0 = scmp.eq.s32.totalorder %s752_s16, 1 }
  0x24   : > { %s811_s7 = sand.u32 1, %s697_s14   ;;  %s452_s8 = sshll.u32 %s701_s15, 7 }
  0x25   : > { %p806_p3 = por %p949_p0, %p36_p10  ;;  %s451_s9 = sshll.u32 %s811_s7, 3 }
  0x26   : > { %s818_s17 = scalar_lea.hbm %s937_s0, %s452_s8  ;;  %s156_s21 = scalar_lea.vmem [#allocation2], %s451_s9 }
  0x27   : > { %s950_s6 = scalar_select %p806_p3, 1, 0 }
  0x28   : > { %s163_s22 = sshll.u32 %s156_s21, 4  ;;  %p820_p11 = pnand %p505_p12, %p38_p13  ;;  %s164_s22 = int_to_ptr.vmem [resolvable:$true] %s163_s22 }
  0x29   : > { %s170_s25 = sand.u32 1, %s701_s15   ;;  %s153_s26 = scalar_lea.sflag [#allocation3], %s811_s7 }
  0x2a   : > { %s573_s27 = scalar_lea.hbm %s818_s17, 128  ;;  %p575_p7 = pneg %p820_p11 }
  0x2b   : > { %p574_p5 = scmp.ne.s32.totalorder %s818_s17, %s573_s27  ;;  %s578_s30 = scalar_lea.hbm %s937_s0, 256 }
  0x2c   : > { %p579_p2 = scmp.lt.s32.totalorder %s818_s17, %s937_s0  ;;  %p580_p12 = scmp.lt.s32.totalorder %s578_s30, %s573_s27 }
  0x2d   : > { %p576_p9 = pnand %p575_p7, %p574_p5 }
  0x2e   : > { %p581_p13 = por %p580_p12, %p579_p2 }
  0x2f   : > { %p577_p10 = pneg %p576_p9 }
  0x31   : > { %p582_p0 = pnand %p581_p13, %p577_p10 }
  0x33   : > { %585 = shalt.err (!%p582_p0)
}
  0x34   : > { %s586_s9 = scalar_lea.vmem %s164_s22, 128  ;;  %s706_s10 = smov [#allocation2]  }
  0x35   : > { %p587_p1 = scmp.ne.s32.totalorder %s164_s22, %s586_s9  ;;  %s591_s11 = sshll.u32 %s706_s10, 4  ;;  %s592_s11 = int_to_ptr.vmem [resolvable:$false] %s591_s11 }
  0x36   : > { %s593_s21 = scalar_lea.vmem %s592_s11, 256  ;;  %p594_p9 = scmp.lt.s32.totalorder %s164_s22, %s592_s11 }
  0x37   : > { %p589_p6 = pnand %p587_p1, %p575_p7  ;;  %p595_p3 = scmp.lt.s32.totalorder %s593_s21, %s586_s9 }
  0x39   : > { %p590_p5 = pneg %p589_p6  ;;  %p596_p4 = por %p595_p3, %p594_p9 }
  0x3b   : > { %p597_p8 = pnand %p596_p4, %p590_p5 }
  0x3d   : > { %600 = shalt.err (!%p597_p8)
}
  0x3e   : > { %496 = dma.hbm_to_vmem [thread:$0]  (!%p820_p11), %s818_s17, 128, %s164_s22, %s153_s26  }
  0x3f   : > { %s453_s27 = sshll.u32 %s701_s15, 4  ;;  %s173_s4 = scalar_lea.vmem [#allocation5], %s811_s7 }
  0x40   : > { %s850_s30 = scalar_lea.hbm %s938_s1, %s453_s27  ;;  %s180_s8 = sshll.u32 %s173_s4, 4  ;;  %s181_s8 = int_to_ptr.vmem [resolvable:$true] %s180_s8 }
  0x41   : > { %s171_s9 = scalar_lea.sflag [#allocation6], %s170_s25  ;;  %s601_s10 = scalar_lea.hbm %s850_s30, 16 }
  0x42   : > { %p602_p1 = scmp.ne.s32.totalorder %s850_s30, %s601_s10  ;;  %s606_s26 = scalar_lea.hbm %s938_s1, 32 }
  0x43   : > { %p607_p8 = scmp.lt.s32.totalorder %s850_s30, %s938_s1  ;;  %p608_p3 = scmp.lt.s32.totalorder %s606_s26, %s601_s10 }
  0x44   : > { %p604_p4 = pnand %p602_p1, %p575_p7 }
  0x45   : > { %p609_p10 = por %p608_p3, %p607_p8 }
  0x46   : > { %p605_p6 = pneg %p604_p4 }
  0x48   : > { %p610_p2 = pnand %p609_p10, %p605_p6 }
  0x4a   : > { %613 = shalt.err (!%p610_p2)
}
  0x4b   : > { %s614_s7 = scalar_lea.vmem %s181_s8, 16  ;;  %s707_s25 = smov [#allocation5]  }
  0x4c   : > { %p615_p12 = scmp.ne.s32.totalorder %s181_s8, %s614_s7  ;;  %s619_s27 = sshll.u32 %s707_s25, 4  ;;  %s620_s27 = int_to_ptr.vmem [resolvable:$false] %s619_s27 }
  0x4d   : > { %s621_s28 = scalar_lea.vmem %s620_s27, 32  ;;  %p622_p5 = scmp.lt.s32.totalorder %s181_s8, %s620_s27 }
  0x4e   : > { %p617_p13 = pnand %p615_p12, %p575_p7  ;;  %p623_p9 = scmp.lt.s32.totalorder %s621_s28, %s614_s7 }
  0x50   : > { %p618_p0 = pneg %p617_p13  ;;  %p624_p1 = por %p623_p9, %p622_p5 }
  0x52   : > { %p625_p4 = pnand %p624_p1, %p618_p0 }
  0x54   : > { %628 = shalt.err (!%p625_p4)
}
  0x55   : > { %499 = dma.hbm_to_vmem [thread:$0]  (!%p820_p11), %s850_s30, 16, %s181_s8, %s171_s9  }
  0x56   : > { %p952_p6 = scmp.ne.s32.totalorder %s947_s20, 0 }
  0x57   : > { %s876_s29 = sand.u32 (!%p952_p6), 1, %s693_s13   ;;  %p953_p7 = scmp.ne.s32.totalorder (!%p952_p6), %s945_s18, 0 }
  0x58   : > { %189 = sbr.rel (%p952_p6) target bundleno = 420 (0x1a4), region = 32  ;;  %s455_s4 = sshll.u32 (!%p952_p6), %s876_s29, 3 }
  0x59   : > { %s192_s10 = scalar_lea.sflag (!%p952_p6), [#allocation3], %s876_s29  ;;  %s195_s17 = scalar_lea.vmem (!%p952_p6), [#allocation2], %s455_s4 }
  0x5d   : > { %672 = dma.done.wait (%p953_p7), %s192_s10, 128  }
  0x5e   : > { %674 = vsyncadd (%p953_p7), %s192_s10, 4294967168  ;;  %s200_s20 = sand.u32 1, %s752_s16   ;;  %s203_s30 = scalar_lea.vmem [#allocation5], %s876_s29 }
  0x5f   : > { %s201_s23 = scalar_lea.sflag [#allocation6], %s200_s20 }
  0x60   : > { %676 = dma.done.wait (%p953_p7), %s201_s23, 16  }
  0x61   : > { %678 = vsyncadd (%p953_p7), %s201_s23, 4294967280  ;;  %p954_p11 = scmp.eq.s32.totalorder %s752_s16, 0 }
  0x63   : > { %680 = dma.done.wait (%p954_p11), [#allocation6], 512   ;;  %p955_p8 = pmov %p954_p11 }
  0x64   : > { %v708_v0 = vmov 0.0   ;;  %vm709_vm0 = vmmov 0   ;;  %vm235_vm1 = vcmask 261120   ;;  %v234_v1 = vld [vmem:[%s195_s17] sm:$0xff]  ;;  %v251_v6 = vld [vmem:[#allocation7] sm:$0xff]  ;;  %v328_v18 = vlaneseq  ;;  %s460_s18 = sshll.u32 %s752_s16, 7 }
  0x65   : > { %682 = vsyncadd (%p955_p8), [#allocation6], 4294966784  ;;  %468 = vmatprep.subr.mxu0 %v708_v0  ;;  %476 = vmatprep.mubr.msk.f32.mxu0 %vm709_vm0, %v708_v0  ;;  %v254_v2 = vld [vmem:[#allocation7 + $0x18] sm:$0xff]  ;;  %v253_v3 = vld [vmem:[#allocation7 + $0x10] sm:$0xff]  ;;  %v236_v4 = vsel %vm235_vm1, %v234_v1, 0.0  ;;  %s233_s8 = scalar_lea.vmem [#allocation8], %s455_s4  ;;  %s346_s11 = scalar_lea.hbm %s940_s3, %s460_s18 }
  0x66   : > { %469 = vmatpush3.msra.mxu0 %v254_v2  ;;  %237 = vadd.xlane.f32.xlu0 %v236_v4  ;;  %v252_v5 = vld [vmem:[#allocation7 + $0x8] sm:$0xff]  ;;  %v329_v19 = vshrl.u32 %v328_v18, 7  ;;  %s348_s9 = sshll.u32 %s233_s8, 4  ;;  %s335_s21 = scalar_lea.sflag [#allocation4], %s876_s29  ;;  %s349_s9 = int_to_ptr.vmem [resolvable:$true] %s348_s9 }
  0x67   : > { %470 = vmatprep.subr.mxu0 %v708_v0  ;;  %v250_v7 = vld [vmem:[%s203_s30] sm:$0x1]  ;;  %s629_s7 = scalar_lea.vmem %s349_s9, 128  ;;  %p956_p10 = scmp.ne.s32.totalorder %s950_s6, 0 }
  0x68   : > { %471 = vmatpush3.msra.mxu0 %v253_v3  ;;  %v330_v21 = vsub.s32 0, %v329_v19  ;;  %p630_p3 = scmp.ne.s32.totalorder %s349_s9, %s629_s7  ;;  %s710_s25 = smov [#allocation8]  }
  0x69   : > { %472 = vmatprep.subr.mxu0 %v708_v0  ;;  %s633_s16 = sshll.u32 %s710_s25, 4  ;;  %s634_s16 = int_to_ptr.vmem [resolvable:$false] %s633_s16 }
  0x6a   : > { %473 = vmatpush3.msra.mxu0 %v252_v5  ;;  %p631_p2 = pnand %p630_p3, %p956_p10  ;;  %s635_s27 = scalar_lea.vmem %s634_s16, 256 }
  0x6b   : > { %474 = vmatprep.subr.mxu0 %v708_v0  ;;  %p636_p13 = scmp.lt.s32.totalorder %s349_s9, %s634_s16  ;;  %p637_p0 = scmp.lt.s32.totalorder %s635_s27, %s629_s7 }
  0x6c   : > { %475 = vmatpush3.msra.mxu0 %v251_v6  ;;  %p632_p12 = pneg %p631_p2 }
  0x6d   : > { %477 = vmatmul.mubr.msk.f32.vlgmr.msra.gmra.mxu0 %vm235_vm1, %v250_v7  ;;  %p638_p5 = por %p637_p0, %p636_p13 }
  0x6f   : > { %p639_p9 = pnand %p638_p5, %p632_p12 }
  0xef   : > { %v238_v8 = vpop.xlane.xlu0 %237 }
  0xf0   : > { %v240_v9 = vmul.f32 0.03125, %v238_v8 }
  0xf2   : > { %v241_v10 = vsub.f32 %v234_v1, %v240_v9 }
  0xf4   : > { %v242_v11 = vmul.f32 %v241_v10, %v241_v10 }
  0xf6   : > { %v243_v12 = vsel %vm235_vm1, %v242_v11, 0.0 }
  0xf7   : > { %244 = vadd.xlane.f32.xlu0 %v243_v12 }
 0x12d   : > { %v324_v13 = vpop.f32.mrf.mxu0 }
 0x12e   : > { %v325_v20 = vadd.f32 1.0, %v324_v13 }
 0x12f   : > { %v478_v14 = vpop.f32.mrf.mxu0 }
 0x130   : > { %v331_v22 = vrot.slane %v325_v20, %v330_v21 }
 0x180   : > { %v245_v15 = vpop.xlane.xlu0 %244 }
 0x181   : > { %v246_v16 = vmul.f32 0.03125, %v245_v15 }
 0x183   : > { %v247_v17 = vadd.f32 1e-05, %v246_v16 }
 0x185   : > { %545 = vrsqrt.f32 %v247_v17 }
 0x192   : > { %v546_v23 = vpop.eup %545 }
 0x193   : > { %v249_v24 = vmul.f32 %v546_v23, %v241_v10 }
 0x195   : > { %v332_v25 = vmul.f32 %v331_v22, %v249_v24 }
 0x197   : > { %333 = vst.msk [vmem:[%s233_s8] sm:$0xff] %vm235_vm1, %v332_v25 }
 0x198   : > { %642 = shalt.err (!%p639_p9)
}
 0x199   : > { %s643_s28 = scalar_lea.hbm %s346_s11, 128  ;;  %s647_s10 = scalar_lea.hbm %s940_s3, 256 }
 0x19a   : > { %p644_p1 = scmp.ne.s32.totalorder %s346_s11, %s643_s28  ;;  %p648_p7 = scmp.lt.s32.totalorder %s346_s11, %s940_s3 }
 0x19b   : > { %p649_p11 = scmp.lt.s32.totalorder %s647_s10, %s643_s28 }
 0x19c   : > { %p645_p4 = pnand %p644_p1, %p956_p10 }
 0x19d   : > { %p650_p8 = por %p649_p11, %p648_p7 }
 0x19e   : > { %p646_p6 = pneg %p645_p4 }
 0x1a0   : > { %p651_p3 = pnand %p650_p8, %p646_p6 }
 0x1a2   : > { %654 = shalt.err (!%p651_p3)
}
 0x1a3   : > { %487 = dma.vmem_to_hbm [thread:$0]  (%p956_p10), %s349_s9, 128, %s346_s11, %s335_s21  }
 0x1a4 PF: > { %s360_s23 = sand.u32 1, %s689_s12   ;;  %p957_p2 = scmp.ne.s32.totalorder %s946_s19, 0 }
 0x1a5   : > { %p958_p12 = scmp.ge.s32.totalorder %s701_s15, 2  ;;  %s361_s30 = scalar_lea.sflag [#allocation4], %s360_s23 }
 0x1a7   : > { %p501_p13 = pnand %p958_p12, %p957_p2 }
 0x1a9   : > { %p502_p0 = pneg %p501_p13 }
 0x1ab   : > { %684 = dma.done.wait (%p502_p0), %s361_s30, 128  }
 0x1ac   : > { %686 = vsyncadd (%p502_p0), %s361_s30, 4294967168  ;;  %p19_p5 = scmp.ge.s32.totalorder %s785_s24, 4   ;;  %s959_s12 = smov %s693_s13 }
 0x1ad   : > { %s960_s13 = smov %s697_s14  ;;  %s961_s14 = smov %s802_s5 }
 0x1ae   : > { %s962_s15 = smov %s785_s24  ;;  %21 = sbr.rel (!%p19_p5) target bundleno = 7 (0x7), region = 94 }
 0x1b3   :  { %366 = vsyncpa [#allocation3], 1 }
 0x1b4   :  { %368 = vsyncpa [#allocation3 + $0x1], 1 }
 0x1b5   :  { %369 = vsyncpa [#allocation6], 1 }
 0x1b6   :  { %371 = vsyncpa [#allocation6 + $0x1], 1 }
 0x1b7   :  { %372 = vsyncpa [#allocation4], 1 }
 0x1b8   :  { %374 = vsyncpa [#allocation4 + $0x1], 1 }

</bundles_post_ra>
